<compile_context>
chip_gen: v5e
topology: v5e:2x2
jax: 0.10.0
libtpu: 0.0.40
codegen_flags: <defaults>
</compile_context>

<pallas_src>
import jax
import jax.numpy as jnp
from jax.experimental import pallas as pl
from jax.experimental.pallas import tpu as pltpu


def _round_up(x, m):
    return -(-x // m) * m


def _perceptual_loss_kernel(patches_ref, w_ref, b_ref, target_ref, out_ref, acc_ref):
    # patches_ref: (1, bt, pc, Cpp_pad) bf16   w_ref: (Cpp_pad, D) bf16 (affine + 1/Np folded)
    # b_ref:       (1, D) f32                  target_ref: (1, bt, D) f32
    # out_ref:     (1, 1, D) f32  per-block, per-lane partial sum of squared diffs
    # acc_ref:     (bt, D) f32 scratch -- running patch sum (1/Np folded into W => mean)
    k = pl.program_id(1)
    nk = pl.num_programs(1)
    _, bt, pc, cpp = patches_ref.shape
    d = w_ref.shape[1]

    @pl.when(k == 0)
    def _():
        acc_ref[...] = jnp.zeros_like(acc_ref)

    # One patch chunk: (bt*pc, Cpp) @ (Cpp, D) on the MXU, f32 accumulation.
    # Only this chunk's emb is live, so VMEM use is independent of Np.
    x = patches_ref[0].reshape(bt * pc, cpp)                 # merges leading dims: free
    emb = jnp.dot(x, w_ref[...], preferred_element_type=jnp.float32)   # (bt*pc, D) f32
    # pc is a multiple of 8 -> this split stays on f32 sublane-tile boundaries.
    acc_ref[...] += jnp.sum(emb.reshape(bt, pc, d), axis=1)            # (bt, D)

    @pl.when(k == nk - 1)
    def _():
        pooled = acc_ref[...] + b_ref[...]                              # (bt, D)
        diff = pooled - target_ref[0]
        out_ref[0] = jnp.sum(diff * diff, axis=0, keepdims=True)        # (1, D)


def perceptual_loss(images, target, w, bias, mean_c, std_c, patch=8, bt=2, pc=64):
    """images: NCHW float32; target: [B, D]; returns scalar MSE(enc(preprocess(images)), target).

    Sizing guidance (real encoder sizes): pick bt*pc as a multiple of 256 for the MXU M dim,
    pc a multiple of 8, and keep 2*bt*pc*Cpp_pad*2B (double-buffered patch stream) +
    Cpp_pad*D*2B (single-buffered W) + bt*pc*D*4B (chunk emb) + bt*D*4B under the VMEM limit.
    On v7x also keep nb = B/bt >= 2 and even so both TensorCores are fed.
    """
    B, C, H, W_ = images.shape
    P = patch
    nh, nw = H // P, W_ // P
    Np = nh * nw
    Cpp = C * P * P
    D = w.shape[1]

    bt = min(bt, B)
    assert B % bt == 0, "choose bt dividing B (padding the batch would need target masking)"
    nb = B // bt

    # Patch-chunk / padding geometry: pc multiple of 8, Np padded to a multiple of pc,
    # Cpp padded to a multiple of 128 lanes (192 -> 256 when patch=8, C=3).
    np8 = _round_up(Np, 8)
    pc = max(8, (min(pc, np8) // 8) * 8)
    Np_pad = _round_up(Np, pc)
    nk = Np_pad // pc
    Cpp_pad = _round_up(Cpp, 128)

    # --- fold preprocess affine AND the 1/Np mean-pool scale into the frozen weight/bias ---
    scale = jnp.repeat(1.0 / std_c.astype(jnp.float32), P * P)          # (Cpp,)
    shift = jnp.repeat(mean_c.astype(jnp.float32), P * P)               # (Cpp,)
    w32 = w.astype(jnp.float32)
    w_folded = (scale[:, None] * w32) * jnp.float32(1.0 / Np)           # (Cpp, D) f32
    w_folded = jnp.pad(w_folded, ((0, Cpp_pad - Cpp), (0, 0))).astype(jnp.bfloat16)
    b_folded = (bias.astype(jnp.float32) - (shift * scale) @ w32).reshape(1, D)  # f32

    # --- patchify in bf16: [B,C,H,W] -> [nb, bt, Np_pad, Cpp_pad]; pads are zero (no-op in sum) ---
    x = images.astype(jnp.bfloat16)
    x = x.reshape(B, C, nh, P, nw, P).transpose(0, 2, 4, 1, 3, 5).reshape(B, Np, Cpp)
    x = jnp.pad(x, ((0, 0), (0, Np_pad - Np), (0, Cpp_pad - Cpp)))
    x = x.reshape(nb, bt, Np_pad, Cpp_pad)

    tgt = target.astype(jnp.float32).reshape(nb, bt, D)

    grid_spec = pltpu.PrefetchScalarGridSpec(
        num_scalar_prefetch=0,
        grid=(nb, nk),                                   # batch blocks (parallel) x patch chunks
        in_specs=[
            pl.BlockSpec((1, bt, pc, Cpp_pad), lambda i, k: (i, 0, k, 0)),   # patch chunk stream
            pl.BlockSpec((Cpp_pad, D), lambda i, k: (0, 0),
                         pipeline_mode=pl.Buffered(1)),                      # invariant weight
            pl.BlockSpec((1, D), lambda i, k: (0, 0),
                         pipeline_mode=pl.Buffered(1)),                      # invariant bias
            pl.BlockSpec((1, bt, D), lambda i, k: (i, 0, 0)),                # target rows
        ],
        out_specs=pl.BlockSpec((1, 1, D), lambda i, k: (i, 0, 0)),           # resident across k
        scratch_shapes=[pltpu.VMEM((bt, D), jnp.float32)],                   # patch-sum accumulator
    )

    cost = pl.CostEstimate(
        flops=2 * B * Np_pad * Cpp_pad * D,
        transcendentals=0,
        bytes_accessed=(nb * bt * Np_pad * Cpp_pad * 2      # patch stream (bf16)
                        + Cpp_pad * D * 2 + D * 4           # folded weight + bias
                        + B * D * 4 + nb * D * 4),          # target + partial outputs
    )

    partials = pl.pallas_call(
        _perceptual_loss_kernel,
        grid_spec=grid_spec,
        out_shape=jax.ShapeDtypeStruct((nb, 1, D), jnp.float32),
        compiler_params=pltpu.CompilerParams(
            dimension_semantics=("parallel", "arbitrary"),   # batch blocks parallel, chunks reduce
            vmem_limit_bytes=48 * 1024 * 1024,               # explicit; within physical on v5e/v6e/v7x
        ),
        cost_estimate=cost,
    )(x, w_folded, b_folded, tgt)

    # tiny final reduction + mean normalization in JAX
    return jnp.sum(partials) / jnp.float32(B * D)


if __name__ == "__main__":
    key = jax.random.PRNGKey(0)
    B, C, H, W = 4, 3, 16, 16
    P = 8
    D = 128
    Np = (H // P) * (W // P)
    Cpp = C * P * P

    k1, k2, k3, k4 = jax.random.split(key, 4)
    images = jax.random.uniform(k1, (B, C, H, W), jnp.float32)          # input image batch
    target = jax.random.normal(k2, (B, D), jnp.float32) * 0.02          # flattened target embedding
    w = jax.random.normal(k3, (Cpp, D), jnp.float32) * 0.02             # frozen encoder weight
    bias = jax.random.normal(k4, (D,), jnp.float32) * 0.01              # frozen encoder bias
    mean_c = jnp.array([0.485, 0.456, 0.406], jnp.float32)              # preprocess mean
    std_c = jnp.array([0.229, 0.224, 0.225], jnp.float32)               # preprocess std

    loss = perceptual_loss(images, target, w, bias, mean_c, std_c, patch=P, bt=2)
    loss = jax.block_until_ready(loss)

    # --- reference 1: pure-JAX with the SAME bf16 folded weights / casts as the kernel ---
    scale = jnp.repeat(1.0 / std_c, P * P)
    shift = jnp.repeat(mean_c, P * P)
    w_f = ((scale[:, None] * w) * jnp.float32(1.0 / Np)).astype(jnp.bfloat16)
    b_f = bias - (shift * scale) @ w
    patches_bf = images.astype(jnp.bfloat16).reshape(B, C, H // P, P, W // P, P)
    patches_bf = patches_bf.transpose(0, 2, 4, 1, 3, 5).reshape(B, Np, Cpp)
    emb = jnp.einsum('bpc,cd->bpd', patches_bf, w_f,
                     preferred_element_type=jnp.float32)
    enc = jnp.sum(emb, axis=1) + b_f                                     # 1/Np folded into w_f
    ref_bf16 = jnp.mean((enc - target) ** 2)

    # --- reference 2: original f32 forward semantics (preprocess -> encode -> pool -> mse) ---
    patches32 = images.reshape(B, C, H // P, P, W // P, P)
    patches32 = patches32.transpose(0, 2, 4, 1, 3, 5).reshape(B, Np, Cpp)
    xn = (patches32 - shift) * scale
    enc32 = jnp.mean(xn @ w + bias, axis=1)
    ref_f32 = jnp.mean((enc32 - target) ** 2)

    assert jnp.allclose(loss, ref_bf16, rtol=1e-3, atol=1e-6), (float(loss), float(ref_bf16))
    assert jnp.allclose(loss, ref_f32, rtol=2e-2, atol=1e-3), (float(loss), float(ref_f32))

    print("KERNEL_OK")
</pallas_src>

<mosaic_0001>
module attributes {stable_mosaic.version = 11 : i64} {
  func.func @_perceptual_loss_kernel(%arg0: i32, %arg1: i32, %arg2: memref<1x2x8x256xbf16, #tpu.memory_space<vmem>>, %arg3: memref<256x128xbf16, #tpu.memory_space<vmem>>, %arg4: memref<1x128xf32, #tpu.memory_space<vmem>>, %arg5: memref<1x2x128xf32, #tpu.memory_space<vmem>>, %arg6: memref<1x1x128xf32, #tpu.memory_space<vmem>>, %arg7: memref<2x128xf32, #tpu.memory_space<vmem>>) attributes {dimension_semantics = [#tpu.dimension_semantics<parallel>, #tpu.dimension_semantics<arbitrary>], iteration_bounds = array<i64: 2, 1>, scalar_prefetch = 0 : i64, scratch_operands = 1 : i64, tpu.core_type = #tpu.core_type<tc>, window_params = [{transform_indices = @transform_0, window_bounds = array<i64: 1, 2, 8, 256>}, {pipeline_mode = #tpu.pipeline_mode<synchronous>, transform_indices = @transform_1, window_bounds = array<i64: 256, 128>}, {pipeline_mode = #tpu.pipeline_mode<synchronous>, transform_indices = @transform_2, window_bounds = array<i64: 1, 128>}, {transform_indices = @transform_3, window_bounds = array<i64: 1, 2, 128>}, {transform_indices = @transform_4, window_bounds = array<i64: 1, 1, 128>}]} {
    %c0_i32 = arith.constant 0 : i32
    %0 = arith.cmpi eq, %arg1, %c0_i32 : i32
    %1 = arith.extui %0 : i1 to i32
    %c0_i32_0 = arith.constant 0 : i32
    %2 = arith.cmpi ne, %1, %c0_i32_0 : i32
    scf.if %2 {
      %cst_13 = arith.constant 0.000000e+00 : f32
      %16 = vector.broadcast %cst_13 : f32 to vector<2x128xf32>
      %c0_14 = arith.constant 0 : index
      %c0_15 = arith.constant 0 : index
      %17 = vector.load %arg7[%c0_14, %c0_15] : memref<2x128xf32, #tpu.memory_space<vmem>>, vector<2x128xf32>
      tpu.vector_store %arg7[%c0_14, %c0_15], %16 {strides = array<i32>} : memref<2x128xf32, #tpu.memory_space<vmem>>, vector<2x128xf32>,
    } else {
    }
    %c0 = arith.constant 0 : index
    %c0_1 = arith.constant 0 : index
    %c0_2 = arith.constant 0 : index
    %c0_3 = arith.constant 0 : index
    %3 = vector.load %arg2[%c0, %c0_1, %c0_2, %c0_3] : memref<1x2x8x256xbf16, #tpu.memory_space<vmem>>, vector<1x2x8x256xbf16>
    %4 = vector.shape_cast %3 : vector<1x2x8x256xbf16> to vector<2x8x256xbf16>
    %5 = vector.shape_cast %4 : vector<2x8x256xbf16> to vector<16x256xbf16>
    %c0_4 = arith.constant 0 : index
    %c0_5 = arith.constant 0 : index
    %6 = vector.load %arg3[%c0_4, %c0_5] : memref<256x128xbf16, #tpu.memory_space<vmem>>, vector<256x128xbf16>
    %cst = arith.constant dense<0.000000e+00> : vector<16x128xf32>
    %7 = tpu.matmul %5, %6, %cst {dimension_numbers = #tpu.dot_dimension_numbers<[1], [0], [0], [1], [0, 0, 1, 1], [], []>} : vector<16x256xbf16>, vector<256x128xbf16>, vector<16x128xf32> -> vector<16x128xf32>
    %c0_6 = arith.constant 0 : index
    %c0_7 = arith.constant 0 : index
    %8 = vector.load %arg7[%c0_6, %c0_7] : memref<2x128xf32, #tpu.memory_space<vmem>>, vector<2x128xf32>
    %9 = vector.shape_cast %7 : vector<16x128xf32> to vector<2x8x128xf32>
    %cst_8 = arith.constant dense<0.000000e+00> : vector<2x128xf32>
    %10 = vector.multi_reduction <add>, %9, %cst_8 [1] : vector<2x8x128xf32> to vector<2x128xf32>
    %11 = arith.addf %8, %10 : vector<2x128xf32>
    %c0_9 = arith.constant 0 : index
    %c0_10 = arith.constant 0 : index
    %12 = vector.load %arg7[%c0_9, %c0_10] : memref<2x128xf32, #tpu.memory_space<vmem>>, vector<2x128xf32>
    tpu.vector_store %arg7[%c0_9, %c0_10], %11 {strides = array<i32>} : memref<2x128xf32, #tpu.memory_space<vmem>>, vector<2x128xf32>,
    %c0_i32_11 = arith.constant 0 : i32
    %13 = arith.cmpi eq, %arg1, %c0_i32_11 : i32
    %14 = arith.extui %13 : i1 to i32
    %c0_i32_12 = arith.constant 0 : i32
    %15 = arith.cmpi ne, %14, %c0_i32_12 : i32
    scf.if %15 {
      %c0_13 = arith.constant 0 : index
      %c0_14 = arith.constant 0 : index
      %16 = vector.load %arg7[%c0_13, %c0_14] : memref<2x128xf32, #tpu.memory_space<vmem>>, vector<2x128xf32>
      %c0_15 = arith.constant 0 : index
      %c0_16 = arith.constant 0 : index
      %17 = vector.load %arg4[%c0_15, %c0_16] : memref<1x128xf32, #tpu.memory_space<vmem>>, vector<1x128xf32>
      %18 = vector.broadcast %17 : vector<1x128xf32> to vector<2x128xf32>
      %19 = arith.addf %16, %18 : vector<2x128xf32>
      %c0_17 = arith.constant 0 : index
      %c0_18 = arith.constant 0 : index
      %c0_19 = arith.constant 0 : index
      %20 = vector.load %arg5[%c0_17, %c0_18, %c0_19] : memref<1x2x128xf32, #tpu.memory_space<vmem>>, vector<1x2x128xf32>
      %21 = vector.shape_cast %20 : vector<1x2x128xf32> to vector<2x128xf32>
      %22 = arith.subf %19, %21 : vector<2x128xf32>
      %23 = arith.mulf %22, %22 : vector<2x128xf32>
      %cst_20 = arith.constant dense<0.000000e+00> : vector<128xf32>
      %24 = vector.multi_reduction <add>, %23, %cst_20 [0] : vector<2x128xf32> to vector<128xf32>
      %25 = vector.shape_cast %24 : vector<128xf32> to vector<1x128xf32>
      %c0_21 = arith.constant 0 : index
      %c0_22 = arith.constant 0 : index
      %c0_23 = arith.constant 0 : index
      %26 = vector.load %arg6[%c0_21, %c0_22, %c0_23] : memref<1x1x128xf32, #tpu.memory_space<vmem>>, vector<1x1x128xf32>
      %27 = vector.shape_cast %26 : vector<1x1x128xf32> to vector<1x128xf32>
      %28 = vector.shape_cast %25 : vector<1x128xf32> to vector<1x1x128xf32>
      tpu.vector_store %arg6[%c0_21, %c0_22, %c0_23], %28 {strides = array<i32>} : memref<1x1x128xf32, #tpu.memory_space<vmem>>, vector<1x1x128xf32>,
    } else {
    }
    return
  }
  func.func @transform_0(%arg0: i32, %arg1: i32) -> (i32, i32, i32, i32) {
    %c0_i32 = arith.constant 0 : i32
    %c0_i32_0 = arith.constant 0 : i32
    %c0_i32_1 = arith.constant 0 : i32
    return %arg0, %c0_i32, %arg1, %c0_i32_0 : i32, i32, i32, i32
  }
  func.func @transform_1(%arg0: i32, %arg1: i32) -> (i32, i32) {
    %c0_i32 = arith.constant 0 : i32
    %c0_i32_0 = arith.constant 0 : i32
    %c0_i32_1 = arith.constant 0 : i32
    return %c0_i32, %c0_i32_0 : i32, i32
  }
  func.func @transform_2(%arg0: i32, %arg1: i32) -> (i32, i32) {
    %c0_i32 = arith.constant 0 : i32
    %c0_i32_0 = arith.constant 0 : i32
    %c0_i32_1 = arith.constant 0 : i32
    return %c0_i32, %c0_i32_0 : i32, i32
  }
  func.func @transform_3(%arg0: i32, %arg1: i32) -> (i32, i32, i32) {
    %c0_i32 = arith.constant 0 : i32
    %c0_i32_0 = arith.constant 0 : i32
    %c0_i32_1 = arith.constant 0 : i32
    return %arg0, %c0_i32, %c0_i32_0 : i32, i32, i32
  }
  func.func @transform_4(%arg0: i32, %arg1: i32) -> (i32, i32, i32) {
    %c0_i32 = arith.constant 0 : i32
    %c0_i32_0 = arith.constant 0 : i32
    %c0_i32_1 = arith.constant 0 : i32
    return %arg0, %c0_i32, %c0_i32_0 : i32, i32, i32
  }
}

</mosaic_0001>

<bundles_post_ra>
// kernel: tpu_custom_call.1
= control target key start
LH: loop header
LB: loop body
LE: loop exit
PB: predicated region body
PF: predicated region fallthrough
CT: control target
= control target key end

     0   :  { %s1214_s0 = inlined_call_operand.hbm [shape: bf16[2,2,8,256], index: 0, kind: input, shape index: {}]   ;;  %s1215_s1 = inlined_call_operand.hbm [shape: bf16[256,128], index: 1, kind: input, shape index: {}]   ;;  %s1216_s2 = inlined_call_operand.vmem [shape: f32[1,128], index: 2, kind: input, shape index: {}]   ;;  %s1217_s3 = inlined_call_operand.hbm [shape: f32[2,2,128], index: 3, kind: input, shape index: {}]   ;;  %s1218_s4 = inlined_call_operand.hbm [shape: f32[2,1,128], index: 4, kind: output, shape index: {}]  }
   0x1   :  { %1220 = sst [smem:[#allocation15_spill]] %s1214_s0 }
   0x2   :  { %1221 = sst [smem:[#allocation16_spill]] %s1215_s1 }
   0x3   :  { %9 = vsyncpa [#allocation4], 0 }
   0x4   :  { %11 = vsyncpa [#allocation4 + $0x1], 0 }
   0x5   :  { %12 = vsyncpa [#allocation7], 0 }
   0x6   :  { %13 = vsyncpa [#allocation5], 0 }
   0x7   :  { %15 = vsyncpa [#allocation5 + $0x1], 0  ;;  %s1024_s15 = smov 0   ;;  %s1026_s16 = smov 0  }
   0x8   :  { %s1028_s17 = smov 0   ;;  %s1030_s18 = smov 0  }
   0x9   :  { %s1032_s19 = smov 0   ;;  %s1034_s20 = smov 0  }
   0xa LB: > { %s33_s21 = sadd.s32 1, %s987_s19  ;;  %s42_s22 = sadd.s32 1, %s979_s17  ;;  %s991_s20 = sphi %s1034_s20, %s21_s20   ;;  %s987_s19 = sphi %s1032_s19, %s1236_s19   ;;  %s983_s18 = sphi %s1030_s18, %s1235_s18   ;;  %s979_s17 = sphi %s1028_s17, %s1234_s17   ;;  %s975_s16 = sphi %s1026_s16, %s1233_s16   ;;  %s971_s15 = sphi %s1024_s15, %s1232_s15  }
   0xb   : > { %p35_p0 = scmp.ge.s32.totalorder %s33_s21, 2  ;;  %p49_p1 = scmp.ne.s32.totalorder %s979_s17, %s975_s16 }
   0xc   : > { %p50_p2 = scmp.eq.s32.totalorder %s991_s20, 0  ;;  %p624_p3 = scmp.ge.s32.totalorder %s991_s20, 2 }
   0xd   : > { %s1238_s21 = smov (%p35_p0, %s33_s21), 0  ;;  %p753_p5 = scmp.lt.s32.totalorder %s991_s20, 2 }
   0xe   : > { %1222 = sst [smem:[#allocation14_spill]] %s1238_s21  ;;  %p1065_p4 = por %p50_p2, %p49_p1 }
   0xf   : > { %s37_s24 = ssub.s32 %s987_s19, %s1238_s21  ;;  %s190_s25 = sand.u32 1, %s991_s20  }
  0x10   : > { %p40_p6 = scmp.eq.s32.totalorder %s37_s24, 0  ;;  %s192_s26 = sand.u32 1, %s979_s17  }
  0x11   : > { %s708_s27 = sshll.u32 %s987_s19, 4  ;;  %s625_s29 = sshll.u32 %s192_s26, 4 }
  0x12   : > { %s1076_s28 = scalar_select %p40_p6, %s979_s17, %s42_s22  }
  0x13   : > { %s1224_s0 = sld [smem:[#allocation15_spill]]  ;;  %s194_s8 = scalar_lea.vmem [#allocation3], %s625_s29 }
  0x14   : > { %s204_s9 = sshll.u32 %s194_s8, 4  ;;  %p1087_p7 = pnand %p753_p5, %p1065_p4  ;;  %s205_s9 = int_to_ptr.vmem [resolvable:$true] %s204_s9 }
  0x15   : > { %s1091_s11 = scalar_lea.sflag [#allocation4], %s190_s25  ;;  %s993_s12 = smov 128  }
  0x16   : > { %s994_s13 = smov 8   ;;  %s1097_s14 = sadd.s32 4294967295, %s991_s20  }
  0x17   : > { %s621_s22 = sadd.s32 4294967294, %s991_s20   ;;  %p55_p8 = scmp.ne.s32.totalorder %s975_s16, %s971_s15 }
  0x18   : > { %p56_p9 = scmp.eq.s32.totalorder %s1097_s14, 0  ;;  %p147_p10 = scmp.eq.s32.totalorder %s1097_s14, 1 }
  0x19   : > { %s201_s6 = scalar_lea.hbm %s1224_s0, %s708_s27  ;;  %p153_p11 = scmp.eq.s32.totalorder %s621_s22, 1 }
  0x1a   : > { %s202_s7 = sshll.u32 %s201_s6, 4  ;;  %p622_p12 = scmp.ge.s32.totalorder %s991_s20, 1  ;;  %s203_s7 = int_to_ptr.hbm [resolvable:$true] %s202_s7 }
  0x1b   : > { %744 = dma.hbm_to_vmem [thread:$0]  (!%p1087_p7), %s203_s7, 256, %s205_s9, %s1091_s11, %s993_s12, %s993_s12, %s994_s13  }
  0x1c   : > { %p1107_p13 = por %p56_p9, %p55_p8  ;;  %p1114_p0 = por %p147_p10, %p49_p1 }
  0x1d   : > { %p1118_p2 = por %p153_p11, %p55_p8  ;;  %p160_p4 = scmp.lt.s32.totalorder %s991_s20, 3 }
  0x1e   : > { %s1229_s1 = sld [smem:[#allocation16_spill]]  ;;  %s995_s6 = smov [#allocation6]  }
  0x1f   : > { %p1126_p5 = pnand %p622_p12, %p160_p4  ;;  %s173_s7 = sshll.u32 %s995_s6, 4  ;;  %s174_s7 = int_to_ptr.vmem [resolvable:$true] %s173_s7 }
  0x20   : > { %s628_s8 = sshll.u32 %s192_s26, 1  ;;  %s629_s9 = sshll.u32 %s987_s19, 1 }
  0x21   : > { %p737_p1 = pneg %p1126_p5  ;;  %s222_s22 = scalar_lea.hbm %s1217_s3, %s629_s9 }
  0x22   : > { %s996_s27 = smov 64   ;;  %s997_s29 = smov 4  }
  0x23   : > { %p738_p6 = pnand %p737_p1, %p56_p9  ;;  %s224_s0 = sshll.u32 %s222_s22, 4  ;;  %s225_s0 = int_to_ptr.hbm [resolvable:$true] %s224_s0 }
  0x24   : > { %s171_s30 = sshll.u32 %s1229_s1, 4  ;;  %s218_s1 = scalar_lea.vmem [#allocation8], %s628_s8  ;;  %s172_s30 = int_to_ptr.hbm [resolvable:$true] %s171_s30 }
  0x25   : > { %740 = dma.hbm_to_vmem [thread:$0]  (!%p738_p6), %s172_s30, 2048, %s174_s7, [#allocation7], %s996_s27, %s996_s27, %s997_s29  }
  0x26   : > { %s226_s21 = sshll.u32 %s218_s1, 4  ;;  %235 = sbr.rel (%p1126_p5) target bundleno = 263 (0x107), region = 36  ;;  %s227_s21 = int_to_ptr.vmem [resolvable:$true] %s226_s21 }
  0x27   : > { %747 = dma.hbm_to_vmem [thread:$0]  (!%p1087_p7), %s225_s0, 32, %s227_s21, %s1091_s11  }
  0x28   : > { %s237_s26 = sand.u32 (!%p1126_p5), 1, %s1097_s14   ;;  %s1147_s6 = sand.u32 (!%p1126_p5), 1, %s975_s16  }
  0x29   : > { %s631_s9 = sshll.u32 (!%p1126_p5), %s1147_s6, 4  ;;  %s238_s12 = scalar_lea.sflag (!%p1126_p5), [#allocation4], %s237_s26 }
  0x2a   : > { %s1150_s30 = scalar_lea.vmem (!%p1126_p5), [#allocation3], %s631_s9 }
  0x2b   : > { %954 = dma.done.wait (%p1107_p13), %s238_s12, 256  }
  0x2c   : > { %956 = vsyncadd (%p1107_p13), %s238_s12, 4294967040 }
  0x2d   : > { %958 = dma.done.wait (%p56_p9), [#allocation7], 2048  }
  0x2e   : > { %960 = vsyncadd (%p56_p9), [#allocation7], 4294965248  ;;  %s633_s0 = sshll.u32 %s1147_s6, 1 }
  0x2f   : > { %s1161_s1 = scalar_lea.vmem [#allocation8], %s633_s0 }
  0x30   : > { %962 = dma.done.wait (%p1107_p13), %s238_s12, 32  }
  0x31   : > { %964 = vsyncadd (%p1107_p13), %s238_s12, 4294967264  ;;  %v718_v0 = vld [vmem:[#allocation6 + $0x38] sm:$0xff]  ;;  %v717_v2 = vld [vmem:[#allocation6 + $0x30] sm:$0xff]  ;;  %v998_v22 = vmov 0.0   ;;  %vm474_vm0 = vcmask 1041409   ;;  %vm491_vm1 = vcmask 1041408   ;;  %s509_s23 = scalar_lea.hbm %s1218_s4, %s983_s18 }
  0x32   : > { %v726_v1 = vld [vmem:[#allocation6 + $0x78] sm:$0xff]  ;;  %431 = vmatpush.bf16.msra.mxu0 %v718_v0  ;;  %v725_v3 = vld [vmem:[#allocation6 + $0x70] sm:$0xff]  ;;  %v716_v4 = vld [vmem:[#allocation6 + $0x28] sm:$0xff]  ;;  %290 = vst [vmem:[#allocation2] sm:$0x3] %v998_v22  ;;  %s285_s5 = scalar_lea.vmem [#allocation9], %s1147_s6 }
  0x33   : > { %445 = vmatpush.bf16.msra.mxu1 %v726_v1  ;;  %v724_v5 = vld [vmem:[#allocation6 + $0x68] sm:$0xff]  ;;  %v715_v6 = vld [vmem:[#allocation6 + $0x20] sm:$0xff]  ;;  %v714_v8 = vld [vmem:[#allocation6 + $0x18] sm:$0xff]  ;;  %s511_s7 = sshll.u32 %s285_s5, 4  ;;  %s513_s8 = sshll.u32 %s509_s23, 4  ;;  %s512_s7 = int_to_ptr.vmem [resolvable:$true] %s511_s7  ;;  %s514_s8 = int_to_ptr.hbm [resolvable:$true] %s513_s8 }
  0x34   : > { %v723_v7 = vld [vmem:[#allocation6 + $0x60] sm:$0xff]  ;;  %v722_v9 = vld [vmem:[#allocation6 + $0x58] sm:$0xff]  ;;  %v713_v10 = vld [vmem:[#allocation6 + $0x10] sm:$0xff]  ;;  %s501_s13 = scalar_lea.sflag [#allocation5], %s1147_s6  ;;  %s915_s22 = sshra.s32 %s514_s8, 4  ;;  %s916_s22 = int_to_ptr.hbm [resolvable:$true] %s915_s22 }
  0x35   : > { %v721_v11 = vld [vmem:[#allocation6 + $0x50] sm:$0xff]  ;;  %v712_v12 = vld [vmem:[#allocation6 + $0x8] sm:$0xff]  ;;  %v711_v14 = vld [vmem:[#allocation6] sm:$0xff]  ;;  %s917_s27 = scalar_lea.hbm %s916_s22, 1  ;;  %s921_s18 = scalar_lea.hbm %s1218_s4, 2 }
  0x36   : > { %432 = vmatpush.bf16.msra.mxu0 %v717_v2  ;;  %v720_v13 = vld [vmem:[#allocation6 + $0x48] sm:$0xff]  ;;  %v719_v15 = vld [vmem:[#allocation6 + $0x40] sm:$0xff]  ;;  %v810_v44 = vld [vmem:[%s1216_s2] ss:$0 sm:$0xff]  ;;  %p918_p7 = scmp.ne.s32.totalorder %s916_s22, %s917_s27  ;;  %p922_p10 = scmp.lt.s32.totalorder %s916_s22, %s1218_s4 }
  0x37   : > { %446 = vmatpush.bf16.msra.mxu1 %v725_v3  ;;  %v636_v16 = vld [vmem:[%s1150_s30] sm:$0xf]  ;;  %v710_v17 = vld [vmem:[%s1150_s30 + $0x4] sm:$0xf0]  ;;  %v709_v18 = vld [vmem:[%s1150_s30 + $0x4] sm:$0xf]  ;;  %p923_p11 = scmp.lt.s32.totalorder %s921_s18, %s917_s27 }
  0x38   : > { %v638_v19 = vld [vmem:[%s1150_s30 + $0x8] sm:$0xf0]  ;;  %v637_v20 = vor.u32 %v710_v17, %v636_v16  ;;  %v488_v46 = vld [vmem:[%s1161_s1] sm:$0x3]  ;;  %p919_p8 = pnand %p918_p7, %p1114_p0 }
  0x39   : > { %v641_v21 = vor.u32 %v709_v18, %v638_v19  ;;  %v459_v40 = vld [vmem:[#allocation2] sm:$0x3]  ;;  %p924_p12 = por %p923_p11, %p922_p10 }
  0x3a   : > { %433 = vmatpush.bf16.msra.mxu0 %v716_v4  ;;  %p920_p9 = pneg %p919_p8 }
  0x3b   : > { %447 = vmatpush.bf16.msra.mxu1 %v724_v5 }
  0x3c   : > { %p925_p13 = pnand %p924_p12, %p920_p9 }
  0x3e   : > { %434 = vmatpush.bf16.msra.mxu0 %v715_v6 }
  0x3f   : > { %448 = vmatpush.bf16.msra.mxu1 %v723_v7 }
  0x42   : > { %435 = vmatpush.bf16.msra.mxu0 %v714_v8 }
  0x43   : > { %449 = vmatpush.bf16.msra.mxu1 %v722_v9 }
  0x46   : > { %436 = vmatpush.bf16.msra.mxu0 %v713_v10 }
  0x47   : > { %450 = vmatpush.bf16.msra.mxu1 %v721_v11 }
  0x4a   : > { %437 = vmatpush.bf16.msra.mxu0 %v712_v12 }
  0x4b   : > { %451 = vmatpush.bf16.msra.mxu1 %v720_v13 }
  0x4e   : > { %438 = vmatpush.bf16.msra.mxu0 %v711_v14 }
  0x4f   : > { %452 = vmatpush.bf16.msra.mxu1 %v719_v15 }
  0x51   : > { %439 = vmatmul.bf16.vlgmr.msra.gmra.mxu0 %v637_v20 }
  0x52   : > { %453 = vmatmul.bf16.vlgmr.msra.gmra.mxu1 %v641_v21 }
  0xce   : > { %v440_v23 = vpop.f32.mrf.mxu0 }
  0xcf   : > { %v454_v24 = vpop.f32.mrf.mxu1 }
  0xd0   : > { %v455_v25 = vadd.f32 %v454_v24, %v440_v23 }
  0xd2   : > { %v460_v26 = vrot.slane %v455_v25, 4 }
  0xd4   : > { %v461_v27 = vadd.f32 %v460_v26, %v455_v25 }
  0xd6   : > { %v442_v28 = vpop.f32.mrf.mxu0  ;;  %v462_v30 = vrot.slane %v461_v27, 2 }
  0xd7   : > { %v456_v29 = vpop.f32.mrf.mxu1 }
  0xd8   : > { %v457_v31 = vadd.f32 %v456_v29, %v442_v28  ;;  %v463_v33 = vadd.f32 %v462_v30, %v461_v27 }
  0xda   : > { %v466_v32 = vrot.slane %v457_v31, 4  ;;  %v464_v36 = vrot.slane %v463_v33, 1 }
  0xdc   : > { %v467_v34 = vadd.f32 %v466_v32, %v457_v31  ;;  %v465_v39 = vadd.f32 %v464_v36, %v463_v33 }
  0xde   : > { %v468_v35 = vrot.slane %v467_v34, 2 }
  0xe0   : > { %v469_v37 = vadd.f32 %v468_v35, %v467_v34 }
  0xe2   : > { %v470_v38 = vrot.slane %v469_v37, 1 }
  0xe4   : > { %v471_v41 = vadd.f32 %v470_v38, %v469_v37 }
  0xe6   : > { %v475_v42 = vsel %vm474_vm0, %v471_v41, %v465_v39 }
  0xe7   : > { %v477_v43 = vadd.f32 %v475_v42, %v459_v40 }
  0xe9   : > { %478 = vst [vmem:[#allocation2] sm:$0x3] %v477_v43 }
  0xf0   : > { %v482_v45 = vld [vmem:[#allocation2] sm:$0x3] }
  0xf1   : > { %v487_v47 = vadd.f32 %v810_v44, %v482_v45 }
  0xf3   : > { %v489_v48 = vsub.f32 %v487_v47, %v488_v46 }
  0xf5   : > { %v490_v49 = vmul.f32 %v489_v48, %v489_v48 }
  0xf7   : > { %v492_v50 = vsel %vm491_vm1, %v490_v49, 0.0 }
  0xf8   : > { %v493_v51 = vrot.slane %v492_v50, 4 }
  0xfa   : > { %v494_v52 = vadd.f32 %v493_v51, %v492_v50 }
  0xfc   : > { %v495_v53 = vrot.slane %v494_v52, 2 }
  0xfe   : > { %v496_v54 = vadd.f32 %v495_v53, %v494_v52 }
 0x100   : > { %v497_v55 = vrot.slane %v496_v54, 1 }
 0x102   : > { %v498_v56 = vadd.f32 %v497_v55, %v496_v54 }
 0x104   : > { %499 = vst [vmem:[%s285_s5] sm:$0x1] %v498_v56 }
 0x105   : > { %928 = shalt.err (!%p925_p13)
}
 0x106   : > { %735 = dma.vmem_to_hbm [thread:$0]  (%p1114_p0), %s512_s7, 16, %s514_s8, %s501_s13  }
 0x107 PF: > { %s525_s6 = sand.u32 1, %s971_s15   ;;  %p749_p4 = pnand %p624_p3, %p1118_p2 }
 0x108   : > { %s526_s30 = scalar_lea.sflag [#allocation5], %s525_s6 }
 0x109   : > { %p750_p5 = pneg %p749_p4 }
 0x10b   : > { %966 = dma.done.wait (%p750_p5), %s526_s30, 16  }
 0x10c   : > { %968 = vsyncadd (%p750_p5), %s526_s30, 4294967280  ;;  %s21_s20 = sadd.s32 1, %s991_s20   ;;  %s1231_s24 = sld [smem:[#allocation14_spill]] }
 0x10d   : > { %p18_p1 = scmp.ge.s32.totalorder %s21_s20, 4   ;;  %s1232_s15 = smov %s975_s16 }
 0x10e   : > { %s1233_s16 = smov %s979_s17  ;;  %s1234_s17 = smov %s1076_s28 }
 0x10f   : > { %s1235_s18 = smov %s987_s19  ;;  %20 = sbr.rel (!%p18_p1) target bundleno = 10 (0xa), region = 104 }
 0x112   : > { %s1236_s19 = smov %s1231_s24 }
 0x114   :  { %531 = vsyncpa [#allocation4], 1 }
 0x115   :  { %533 = vsyncpa [#allocation4 + $0x1], 1 }
 0x116   :  { %534 = vsyncpa [#allocation7], 1 }
 0x117   :  { %535 = vsyncpa [#allocation5], 1 }
 0x118   :  { %537 = vsyncpa [#allocation5 + $0x1], 1 }

</bundles_post_ra>
